<compile_context>
chip_gen: v5e
topology: v5e:2x2
jax: 0.10.0
libtpu: 0.0.40
codegen_flags: <defaults>
</compile_context>

<pallas_src>
import math
import functools

import jax
import jax.numpy as jnp
from jax.experimental import pallas as pl
from jax.experimental.pallas import tpu as pltpu


def _round_up(x, m):
    return ((x + m - 1) // m) * m


# ---------------------------------------------------------------------------
# Kernels
# ---------------------------------------------------------------------------

def _matmul_kernel(a_ref, b_ref, o_ref, acc_ref):
    """Tiled C = A @ B with f32 accumulation across the K grid axis."""
    k = pl.program_id(2)

    @pl.when(k == 0)
    def _():
        acc_ref[...] = jnp.zeros_like(acc_ref)

    acc_ref[...] += jnp.dot(
        a_ref[...], b_ref[...], preferred_element_type=jnp.float32
    )

    @pl.when(k == pl.num_programs(2) - 1)
    def _():
        o_ref[...] = acc_ref[...].astype(o_ref.dtype)


def _matmul_bias_kernel(a_ref, b_ref, bias_ref, o_ref, acc_ref):
    """Tiled C = A @ B + bias (row-broadcast), f32 accumulation."""
    k = pl.program_id(2)

    @pl.when(k == 0)
    def _():
        acc_ref[...] = jnp.zeros_like(acc_ref)

    acc_ref[...] += jnp.dot(
        a_ref[...], b_ref[...], preferred_element_type=jnp.float32
    )

    @pl.when(k == pl.num_programs(2) - 1)
    def _():
        o_ref[...] = (
            acc_ref[...] + bias_ref[...].astype(jnp.float32)
        ).astype(o_ref.dtype)


def _matmul_single_kernel(a_ref, b_ref, o_ref):
    """Single-K fast path: C = A @ B, no accumulator scratch."""
    o_ref[...] = jnp.dot(
        a_ref[...], b_ref[...], preferred_element_type=jnp.float32
    ).astype(o_ref.dtype)


def _matmul_bias_single_kernel(a_ref, b_ref, bias_ref, o_ref):
    """Single-K fast path: C = A @ B + bias, no accumulator scratch."""
    acc = jnp.dot(a_ref[...], b_ref[...], preferred_element_type=jnp.float32)
    o_ref[...] = (acc + bias_ref[...].astype(jnp.float32)).astype(o_ref.dtype)


# ---------------------------------------------------------------------------
# Host-side wrapper for one tiled GEMM
# ---------------------------------------------------------------------------

def _pallas_matmul(a, b, bias, *, tm, tn, tk, out_dtype=jnp.float32):
    """C = a @ b (+ bias). All shapes must already be tile multiples."""
    M, K = a.shape
    K2, N = b.shape
    assert K == K2, (K, K2)
    assert M % tm == 0 and N % tn == 0 and K % tk == 0, (M, N, K, tm, tn, tk)

    kt = K // tk
    single_k = kt == 1

    out_itemsize = jnp.dtype(out_dtype).itemsize
    bias_bytes = bias.size * bias.dtype.itemsize if bias is not None else 0
    cost = pl.CostEstimate(
        flops=2 * M * N * K,
        transcendentals=0,
        bytes_accessed=(
            a.size * a.dtype.itemsize
            + b.size * b.dtype.itemsize
            + M * N * out_itemsize
            + bias_bytes
        ),
    )

    # Per-step VMEM: double-buffered A, B, (bias), out tiles (+ f32 accumulator
    # when the K grid has more than one step).
    step_bytes = 2 * (
        tm * tk * a.dtype.itemsize
        + tk * tn * b.dtype.itemsize
        + tm * tn * out_itemsize
        + (tn * 4 if bias is not None else 0)
    ) + (0 if single_k else tm * tn * 4)
    vmem_limit = int(min(max(4 * step_bytes, 16 * 1024 * 1024), 32 * 1024 * 1024))

    if single_k:
        grid = (M // tm, N // tn)
        in_specs = [
            pl.BlockSpec((tm, tk), lambda i, j: (i, 0)),
            pl.BlockSpec((tk, tn), lambda i, j: (0, j)),
        ]
        out_spec = pl.BlockSpec((tm, tn), lambda i, j: (i, j))
        operands = [a, b]
        kernel = _matmul_single_kernel
        if bias is not None:
            in_specs.append(pl.BlockSpec((1, tn), lambda i, j: (0, j)))
            operands.append(bias)
            kernel = _matmul_bias_single_kernel
        scratch_shapes = []
        dim_sem = ("parallel", "parallel")
    else:
        grid = (M // tm, N // tn, kt)
        in_specs = [
            pl.BlockSpec((tm, tk), lambda i, j, k: (i, k)),
            pl.BlockSpec((tk, tn), lambda i, j, k: (k, j)),
        ]
        out_spec = pl.BlockSpec((tm, tn), lambda i, j, k: (i, j))
        operands = [a, b]
        kernel = _matmul_kernel
        if bias is not None:
            in_specs.append(pl.BlockSpec((1, tn), lambda i, j, k: (0, j)))
            operands.append(bias)
            kernel = _matmul_bias_kernel
        scratch_shapes = [pltpu.VMEM((tm, tn), jnp.float32)]
        dim_sem = ("parallel", "parallel", "arbitrary")

    return pl.pallas_call(
        kernel,
        out_shape=jax.ShapeDtypeStruct((M, N), out_dtype),
        grid_spec=pltpu.PrefetchScalarGridSpec(
            num_scalar_prefetch=0,
            grid=grid,
            in_specs=in_specs,
            out_specs=out_spec,
            scratch_shapes=scratch_shapes,
        ),
        compiler_params=pltpu.CompilerParams(
            dimension_semantics=dim_sem,
            vmem_limit_bytes=vmem_limit,
        ),
        cost_estimate=cost,
    )(*operands)


# ---------------------------------------------------------------------------
# GCN forward
# ---------------------------------------------------------------------------

@functools.partial(jax.jit, static_argnames=("use_bf16",))
def gcn_forward(x, adj, weight, bias=None, *, use_bf16=False):
    """GraphConvolution.forward: adj @ (x @ weight) [+ bias], f32 output."""
    n, f_in = x.shape
    f_out = weight.shape[1]

    # Tile sizes: always lane-dense multiples of 128, clamped to the
    # rounded-up problem dims (never a raw full-dimension fallback).
    t_n = min(512, _round_up(n, 128))       # node dim: M of both GEMMs, K of 2nd
    t_fi = min(512, _round_up(f_in, 128))   # K of the 1st GEMM (contraction)
    t_fo = min(256, _round_up(f_out, 128))  # output-feature (N) dim of both GEMMs

    n_pad = _round_up(n, t_n)
    fi_pad = _round_up(f_in, t_fi)
    fo_pad = _round_up(f_out, t_fo)

    in_dtype = jnp.bfloat16 if use_bf16 else jnp.float32

    x_p = jnp.pad(x.astype(in_dtype), ((0, n_pad - n), (0, fi_pad - f_in)))
    w_p = jnp.pad(
        weight.astype(in_dtype), ((0, fi_pad - f_in), (0, fo_pad - f_out))
    )
    adj_p = jnp.pad(adj.astype(in_dtype), ((0, n_pad - n), (0, n_pad - n)))
    bias_p = None
    if bias is not None:
        bias_p = jnp.pad(
            bias.astype(jnp.float32).reshape(1, f_out),
            ((0, 0), (0, fo_pad - f_out)),
        )

    # support = x @ W  (no bias; output stays padded & lane-dense in HBM)
    support = _pallas_matmul(
        x_p, w_p, None, tm=t_n, tn=t_fo, tk=t_fi, out_dtype=in_dtype
    )

    # output = adj @ support (+ bias)
    out_p = _pallas_matmul(
        adj_p, support, bias_p, tm=t_n, tn=t_fo, tk=t_n, out_dtype=jnp.float32
    )

    return out_p[:n, :f_out]


def init_gcn_params(key, in_features, out_features, with_bias=True):
    """Deterministic init matching reset_parameters(): U(-stdv, stdv)."""
    stdv = 1.0 / math.sqrt(out_features)
    kw, kb = jax.random.split(key)
    weight = jax.random.uniform(
        kw, (in_features, out_features), jnp.float32, minval=-stdv, maxval=stdv
    )
    bias = (
        jax.random.uniform(
            kb, (out_features,), jnp.float32, minval=-stdv, maxval=stdv
        )
        if with_bias
        else None
    )
    return weight, bias


def _make_graph(key, n, f_in):
    k_x, k_adj = jax.random.split(key)
    x = jax.random.normal(k_x, (n, f_in), dtype=jnp.float32)
    # Symmetric row-normalized dense adjacency (what a GCN typically sees).
    a_raw = (jax.random.uniform(k_adj, (n, n)) < 0.1).astype(jnp.float32)
    a_sym = jnp.maximum(a_raw, a_raw.T) + jnp.eye(n, dtype=jnp.float32)
    deg = jnp.sum(a_sym, axis=1, keepdims=True)
    adj = a_sym / deg
    return x, adj


if __name__ == "__main__":
    key = jax.random.PRNGKey(0)
    k_g1, k_p1, k_g2, k_p2 = jax.random.split(key, 4)

    # ---- Test 1: small graph, non-128-divisible shapes (single-K fast path).
    N, F_IN, F_OUT = 200, 96, 48
    x, adj = _make_graph(k_g1, N, F_IN)
    weight, bias = init_gcn_params(k_p1, F_IN, F_OUT, with_bias=True)

    ref = adj @ (x @ weight) + bias[None, :]
    ref_nb = adj @ (x @ weight)

    out = jax.block_until_ready(gcn_forward(x, adj, weight, bias))
    assert out.shape == (N, F_OUT)
    assert jnp.allclose(out, ref, atol=1e-4, rtol=1e-4), "f32 mismatch vs reference"

    out_nb = jax.block_until_ready(gcn_forward(x, adj, weight, None))
    assert jnp.allclose(out_nb, ref_nb, atol=1e-4, rtol=1e-4), "no-bias mismatch"

    out_bf16 = jax.block_until_ready(gcn_forward(x, adj, weight, bias, use_bf16=True))
    assert jnp.allclose(out_bf16, ref, atol=5e-2, rtol=5e-2), "bf16 mismatch"

    # ---- Test 2: larger in-feature dim to exercise the K-accumulation path.
    N2, F_IN2, F_OUT2 = 300, 700, 20
    x2, adj2 = _make_graph(k_g2, N2, F_IN2)
    weight2, bias2 = init_gcn_params(k_p2, F_IN2, F_OUT2, with_bias=True)

    ref2 = adj2 @ (x2 @ weight2) + bias2[None, :]
    out2 = jax.block_until_ready(gcn_forward(x2, adj2, weight2, bias2))
    assert out2.shape == (N2, F_OUT2)
    assert jnp.allclose(out2, ref2, atol=1e-3, rtol=1e-3), "multi-K mismatch"

    print("KERNEL_OK")
</pallas_src>

<mosaic_0001>
module attributes {stable_mosaic.version = 11 : i64} {
  func.func @_matmul_single_kernel(%arg0: i32, %arg1: i32, %arg2: memref<256x128xf32, #tpu.memory_space<vmem>>, %arg3: memref<128x128xf32, #tpu.memory_space<vmem>>, %arg4: memref<256x128xf32, #tpu.memory_space<vmem>>) attributes {dimension_semantics = [#tpu.dimension_semantics<parallel>, #tpu.dimension_semantics<parallel>], iteration_bounds = array<i64: 1, 1>, scalar_prefetch = 0 : i64, scratch_operands = 0 : i64, tpu.core_type = #tpu.core_type<tc>, window_params = [{transform_indices = @transform_0, window_bounds = array<i64: 256, 128>}, {transform_indices = @transform_1, window_bounds = array<i64: 128, 128>}, {transform_indices = @transform_2, window_bounds = array<i64: 256, 128>}]} {
    %c0 = arith.constant 0 : index
    %c0_0 = arith.constant 0 : index
    %0 = vector.load %arg2[%c0, %c0_0] : memref<256x128xf32, #tpu.memory_space<vmem>>, vector<256x128xf32>
    %c0_1 = arith.constant 0 : index
    %c0_2 = arith.constant 0 : index
    %1 = vector.load %arg3[%c0_1, %c0_2] : memref<128x128xf32, #tpu.memory_space<vmem>>, vector<128x128xf32>
    %cst = arith.constant dense<0.000000e+00> : vector<256x128xf32>
    %2 = tpu.matmul %0, %1, %cst {dimension_numbers = #tpu.dot_dimension_numbers<[1], [0], [0], [1], [0, 0, 1, 1], [], []>} : vector<256x128xf32>, vector<128x128xf32>, vector<256x128xf32> -> vector<256x128xf32>
    %c0_3 = arith.constant 0 : index
    %c0_4 = arith.constant 0 : index
    %3 = vector.load %arg4[%c0_3, %c0_4] : memref<256x128xf32, #tpu.memory_space<vmem>>, vector<256x128xf32>
    tpu.vector_store %arg4[%c0_3, %c0_4], %2 {strides = array<i32>} : memref<256x128xf32, #tpu.memory_space<vmem>>, vector<256x128xf32>,
    return
  }
  func.func @transform_0(%arg0: i32, %arg1: i32) -> (i32, i32) {
    %c0_i32 = arith.constant 0 : i32
    %c0_i32_0 = arith.constant 0 : i32
    return %arg0, %c0_i32 : i32, i32
  }
  func.func @transform_1(%arg0: i32, %arg1: i32) -> (i32, i32) {
    %c0_i32 = arith.constant 0 : i32
    %c0_i32_0 = arith.constant 0 : i32
    return %c0_i32, %arg1 : i32, i32
  }
  func.func @transform_2(%arg0: i32, %arg1: i32) -> (i32, i32) {
    %c0_i32 = arith.constant 0 : i32
    return %arg0, %arg1 : i32, i32
  }
}

module attributes {stable_mosaic.version = 11 : i64} {
  func.func @_matmul_bias_single_kernel(%arg0: i32, %arg1: i32, %arg2: memref<256x256xf32, #tpu.memory_space<vmem>>, %arg3: memref<256x128xf32, #tpu.memory_space<vmem>>, %arg4: memref<1x128xf32, #tpu.memory_space<vmem>>, %arg5: memref<256x128xf32, #tpu.memory_space<vmem>>) attributes {dimension_semantics = [#tpu.dimension_semantics<parallel>, #tpu.dimension_semantics<parallel>], iteration_bounds = array<i64: 1, 1>, scalar_prefetch = 0 : i64, scratch_operands = 0 : i64, tpu.core_type = #tpu.core_type<tc>, window_params = [{transform_indices = @transform_0, window_bounds = array<i64: 256, 256>}, {transform_indices = @transform_1, window_bounds = array<i64: 256, 128>}, {transform_indices = @transform_2, window_bounds = array<i64: 1, 128>}, {transform_indices = @transform_3, window_bounds = array<i64: 256, 128>}]} {
    %c0 = arith.constant 0 : index
    %c0_0 = arith.constant 0 : index
    %0 = vector.load %arg2[%c0, %c0_0] : memref<256x256xf32, #tpu.memory_space<vmem>>, vector<256x256xf32>
    %c0_1 = arith.constant 0 : index
    %c0_2 = arith.constant 0 : index
    %1 = vector.load %arg3[%c0_1, %c0_2] : memref<256x128xf32, #tpu.memory_space<vmem>>, vector<256x128xf32>
    %cst = arith.constant dense<0.000000e+00> : vector<256x128xf32>
    %2 = tpu.matmul %0, %1, %cst {dimension_numbers = #tpu.dot_dimension_numbers<[1], [0], [0], [1], [0, 0, 1, 1], [], []>} : vector<256x256xf32>, vector<256x128xf32>, vector<256x128xf32> -> vector<256x128xf32>
    %c0_3 = arith.constant 0 : index
    %c0_4 = arith.constant 0 : index
    %3 = vector.load %arg4[%c0_3, %c0_4] : memref<1x128xf32, #tpu.memory_space<vmem>>, vector<1x128xf32>
    %4 = vector.broadcast %3 : vector<1x128xf32> to vector<256x128xf32>
    %5 = arith.addf %2, %4 : vector<256x128xf32>
    %c0_5 = arith.constant 0 : index
    %c0_6 = arith.constant 0 : index
    %6 = vector.load %arg5[%c0_5, %c0_6] : memref<256x128xf32, #tpu.memory_space<vmem>>, vector<256x128xf32>
    tpu.vector_store %arg5[%c0_5, %c0_6], %5 {strides = array<i32>} : memref<256x128xf32, #tpu.memory_space<vmem>>, vector<256x128xf32>,
    return
  }
  func.func @transform_0(%arg0: i32, %arg1: i32) -> (i32, i32) {
    %c0_i32 = arith.constant 0 : i32
    %c0_i32_0 = arith.constant 0 : i32
    return %arg0, %c0_i32 : i32, i32
  }
  func.func @transform_1(%arg0: i32, %arg1: i32) -> (i32, i32) {
    %c0_i32 = arith.constant 0 : i32
    %c0_i32_0 = arith.constant 0 : i32
    return %c0_i32, %arg1 : i32, i32
  }
  func.func @transform_2(%arg0: i32, %arg1: i32) -> (i32, i32) {
    %c0_i32 = arith.constant 0 : i32
    %c0_i32_0 = arith.constant 0 : i32
    return %c0_i32, %arg1 : i32, i32
  }
  func.func @transform_3(%arg0: i32, %arg1: i32) -> (i32, i32) {
    %c0_i32 = arith.constant 0 : i32
    return %arg0, %arg1 : i32, i32
  }
}

</mosaic_0001>

<bundles_post_ra>
// kernel: gcn_forward.2
= control target key start
LH: loop header
LB: loop body
LE: loop exit
PB: predicated region body
PF: predicated region fallthrough
CT: control target
= control target key end

     0   :  { %s511_s1 = inlined_call_operand.vmem [shape: f32[128,128], index: 1, kind: input, shape index: {}]   ;;  %s512_s0 = inlined_call_operand.vmem [shape: f32[256,128], index: 0, kind: input, shape index: {}]   ;;  %s513_s2 = inlined_call_operand.vmem [shape: f32[256,128], index: 2, kind: output, shape index: {}]  }
   0x1   :  { %v58_v0 = vld [vmem:[%s511_s1 + $0x78] sm:$0xff]  ;;  %v57_v1 = vld [vmem:[%s511_s1 + $0x70] sm:$0xff]  ;;  %v56_v2 = vld [vmem:[%s511_s1 + $0x68] sm:$0xff] }
   0x2   :  { %209 = vmatpush.msra.mxu2 %v58_v0  ;;  %210 = vmatpush.msra.mxu3 %v58_v0  ;;  %v55_v3 = vld [vmem:[%s511_s1 + $0x60] sm:$0xff]  ;;  %v54_v4 = vld [vmem:[%s511_s1 + $0x58] sm:$0xff]  ;;  %v53_v5 = vld [vmem:[%s511_s1 + $0x50] sm:$0xff] }
   0x3   :  { %59 = vmatpush.msra.mxu0 %v58_v0  ;;  %208 = vmatpush.msra.mxu1 %v58_v0  ;;  %v52_v6 = vld [vmem:[%s511_s1 + $0x48] sm:$0xff]  ;;  %v51_v7 = vld [vmem:[%s511_s1 + $0x40] sm:$0xff]  ;;  %v50_v8 = vld [vmem:[%s511_s1 + $0x38] sm:$0xff] }
   0x4   :  { %212 = vmatpush.msra.mxu2 %v57_v1  ;;  %213 = vmatpush.msra.mxu3 %v57_v1  ;;  %v49_v9 = vld [vmem:[%s511_s1 + $0x30] sm:$0xff]  ;;  %v48_v10 = vld [vmem:[%s511_s1 + $0x28] sm:$0xff]  ;;  %v47_v11 = vld [vmem:[%s511_s1 + $0x20] sm:$0xff] }
   0x5   :  { %60 = vmatpush.msra.mxu0 %v57_v1  ;;  %211 = vmatpush.msra.mxu1 %v57_v1  ;;  %v46_v12 = vld [vmem:[%s511_s1 + $0x18] sm:$0xff]  ;;  %v45_v13 = vld [vmem:[%s511_s1 + $0x10] sm:$0xff]  ;;  %v44_v14 = vld [vmem:[%s511_s1 + $0x8] sm:$0xff] }
   0x6   :  { %215 = vmatpush.msra.mxu2 %v56_v2  ;;  %216 = vmatpush.msra.mxu3 %v56_v2  ;;  %v43_v15 = vld [vmem:[%s511_s1] sm:$0xff]  ;;  %v28_v20 = vld [vmem:[%s512_s0 + $0x88] sm:$0xff]  ;;  %v29_v24 = vld [vmem:[%s512_s0 + $0x90] sm:$0xff] }
   0x7   :  { %61 = vmatpush.msra.mxu0 %v56_v2  ;;  %214 = vmatpush.msra.mxu1 %v56_v2  ;;  %v27_v16 = vld [vmem:[%s512_s0 + $0x80] sm:$0xff]  ;;  %v36_v21 = vld [vmem:[%s512_s0 + $0xc8] sm:$0xff]  ;;  %v37_v25 = vld [vmem:[%s512_s0 + $0xd0] sm:$0xff] }
   0x8   :  { %218 = vmatpush.msra.mxu2 %v55_v3  ;;  %219 = vmatpush.msra.mxu3 %v55_v3  ;;  %v35_v17 = vld [vmem:[%s512_s0 + $0xc0] sm:$0xff]  ;;  %v12_v22 = vld [vmem:[%s512_s0 + $0x8] sm:$0xff]  ;;  %v13_v26 = vld [vmem:[%s512_s0 + $0x10] sm:$0xff] }
   0x9   :  { %62 = vmatpush.msra.mxu0 %v55_v3  ;;  %217 = vmatpush.msra.mxu1 %v55_v3  ;;  %v11_v18 = vld [vmem:[%s512_s0] sm:$0xff]  ;;  %v20_v23 = vld [vmem:[%s512_s0 + $0x48] sm:$0xff]  ;;  %v21_v27 = vld [vmem:[%s512_s0 + $0x50] sm:$0xff] }
   0xa   :  { %221 = vmatpush.msra.mxu2 %v54_v4  ;;  %222 = vmatpush.msra.mxu3 %v54_v4  ;;  %v19_v19 = vld [vmem:[%s512_s0 + $0x40] sm:$0xff]  ;;  %v30_v28 = vld [vmem:[%s512_s0 + $0x98] sm:$0xff]  ;;  %v32_v36 = vld [vmem:[%s512_s0 + $0xa8] sm:$0xff] }
   0xb   :  { %63 = vmatpush.msra.mxu0 %v54_v4  ;;  %220 = vmatpush.msra.mxu1 %v54_v4  ;;  %v38_v29 = vld [vmem:[%s512_s0 + $0xd8] sm:$0xff]  ;;  %v31_v32 = vld [vmem:[%s512_s0 + $0xa0] sm:$0xff]  ;;  %v40_v37 = vld [vmem:[%s512_s0 + $0xe8] sm:$0xff] }
   0xc   :  { %224 = vmatpush.msra.mxu2 %v53_v5  ;;  %225 = vmatpush.msra.mxu3 %v53_v5  ;;  %v14_v30 = vld [vmem:[%s512_s0 + $0x18] sm:$0xff]  ;;  %v39_v33 = vld [vmem:[%s512_s0 + $0xe0] sm:$0xff]  ;;  %v16_v38 = vld [vmem:[%s512_s0 + $0x28] sm:$0xff] }
   0xd   :  { %64 = vmatpush.msra.mxu0 %v53_v5  ;;  %223 = vmatpush.msra.mxu1 %v53_v5  ;;  %v22_v31 = vld [vmem:[%s512_s0 + $0x58] sm:$0xff]  ;;  %v15_v34 = vld [vmem:[%s512_s0 + $0x20] sm:$0xff]  ;;  %v24_v39 = vld [vmem:[%s512_s0 + $0x68] sm:$0xff] }
   0xe   :  { %227 = vmatpush.msra.mxu2 %v52_v6  ;;  %228 = vmatpush.msra.mxu3 %v52_v6  ;;  %v23_v35 = vld [vmem:[%s512_s0 + $0x60] sm:$0xff]  ;;  %v33_v40 = vld [vmem:[%s512_s0 + $0xb0] sm:$0xff]  ;;  %v34_v44 = vld [vmem:[%s512_s0 + $0xb8] sm:$0xff] }
   0xf   :  { %65 = vmatpush.msra.mxu0 %v52_v6  ;;  %226 = vmatpush.msra.mxu1 %v52_v6  ;;  %v41_v41 = vld [vmem:[%s512_s0 + $0xf0] sm:$0xff]  ;;  %v42_v45 = vld [vmem:[%s512_s0 + $0xf8] sm:$0xff] }
  0x10   :  { %230 = vmatpush.msra.mxu2 %v51_v7  ;;  %231 = vmatpush.msra.mxu3 %v51_v7  ;;  %v17_v42 = vld [vmem:[%s512_s0 + $0x30] sm:$0xff]  ;;  %v18_v46 = vld [vmem:[%s512_s0 + $0x38] sm:$0xff] }
  0x11   :  { %66 = vmatpush.msra.mxu0 %v51_v7  ;;  %229 = vmatpush.msra.mxu1 %v51_v7  ;;  %v25_v43 = vld [vmem:[%s512_s0 + $0x70] sm:$0xff]  ;;  %v26_v47 = vld [vmem:[%s512_s0 + $0x78] sm:$0xff] }
  0x12   :  { %233 = vmatpush.msra.mxu2 %v50_v8  ;;  %234 = vmatpush.msra.mxu3 %v50_v8 }
  0x13   :  { %67 = vmatpush.msra.mxu0 %v50_v8  ;;  %232 = vmatpush.msra.mxu1 %v50_v8 }
  0x14   :  { %236 = vmatpush.msra.mxu2 %v49_v9  ;;  %237 = vmatpush.msra.mxu3 %v49_v9 }
  0x15   :  { %68 = vmatpush.msra.mxu0 %v49_v9  ;;  %235 = vmatpush.msra.mxu1 %v49_v9 }
  0x16   :  { %239 = vmatpush.msra.mxu2 %v48_v10  ;;  %240 = vmatpush.msra.mxu3 %v48_v10 }
  0x17   :  { %69 = vmatpush.msra.mxu0 %v48_v10  ;;  %238 = vmatpush.msra.mxu1 %v48_v10 }
  0x18   :  { %242 = vmatpush.msra.mxu2 %v47_v11  ;;  %243 = vmatpush.msra.mxu3 %v47_v11 }
  0x19   :  { %70 = vmatpush.msra.mxu0 %v47_v11  ;;  %241 = vmatpush.msra.mxu1 %v47_v11 }
  0x1a   :  { %245 = vmatpush.msra.mxu2 %v46_v12  ;;  %246 = vmatpush.msra.mxu3 %v46_v12 }
  0x1b   :  { %71 = vmatpush.msra.mxu0 %v46_v12  ;;  %244 = vmatpush.msra.mxu1 %v46_v12 }
  0x1c   :  { %248 = vmatpush.msra.mxu2 %v45_v13  ;;  %249 = vmatpush.msra.mxu3 %v45_v13 }
  0x1d   :  { %72 = vmatpush.msra.mxu0 %v45_v13  ;;  %247 = vmatpush.msra.mxu1 %v45_v13 }
  0x1e   :  { %251 = vmatpush.msra.mxu2 %v44_v14  ;;  %252 = vmatpush.msra.mxu3 %v44_v14 }
  0x1f   :  { %73 = vmatpush.msra.mxu0 %v44_v14  ;;  %250 = vmatpush.msra.mxu1 %v44_v14 }
  0x20   :  { %254 = vmatpush.msra.mxu2 %v43_v15  ;;  %255 = vmatpush.msra.mxu3 %v43_v15 }
  0x21   :  { %123 = vmatmul.f32.vlgmr.msra.gmra.mxu2 %v27_v16  ;;  %147 = vmatmul.f32.vlgmr.msra.gmra.mxu3 %v35_v17 }
  0x22   :  { %74 = vmatpush.msra.mxu0 %v43_v15  ;;  %253 = vmatpush.msra.mxu1 %v43_v15 }
  0x23   :  { %75 = vmatmul.f32.vlgmr.msra.gmra.mxu0 %v11_v18  ;;  %99 = vmatmul.f32.vlgmr.msra.gmra.mxu1 %v19_v19 }
  0x29   :  { %126 = vmatmul.f32.gmra.mxu2 %v28_v20  ;;  %150 = vmatmul.f32.gmra.mxu3 %v36_v21 }
  0x2b   :  { %78 = vmatmul.f32.gmra.mxu0 %v12_v22  ;;  %102 = vmatmul.f32.gmra.mxu1 %v20_v23 }
  0x31   :  { %129 = vmatmul.f32.gmra.mxu2 %v29_v24  ;;  %153 = vmatmul.f32.gmra.mxu3 %v37_v25 }
  0x33   :  { %81 = vmatmul.f32.gmra.mxu0 %v13_v26  ;;  %105 = vmatmul.f32.gmra.mxu1 %v21_v27 }
  0x39   :  { %132 = vmatmul.f32.gmra.mxu2 %v30_v28  ;;  %156 = vmatmul.f32.gmra.mxu3 %v38_v29 }
  0x3b   :  { %84 = vmatmul.f32.gmra.mxu0 %v14_v30  ;;  %108 = vmatmul.f32.gmra.mxu1 %v22_v31 }
  0x41   :  { %135 = vmatmul.f32.gmra.mxu2 %v31_v32  ;;  %159 = vmatmul.f32.gmra.mxu3 %v39_v33 }
  0x43   :  { %87 = vmatmul.f32.gmra.mxu0 %v15_v34  ;;  %111 = vmatmul.f32.gmra.mxu1 %v23_v35 }
  0x49   :  { %138 = vmatmul.f32.gmra.mxu2 %v32_v36  ;;  %162 = vmatmul.f32.gmra.mxu3 %v40_v37 }
  0x4b   :  { %90 = vmatmul.f32.gmra.mxu0 %v16_v38  ;;  %114 = vmatmul.f32.gmra.mxu1 %v24_v39 }
  0x51   :  { %141 = vmatmul.f32.gmra.mxu2 %v33_v40  ;;  %165 = vmatmul.f32.gmra.mxu3 %v41_v41 }
  0x53   :  { %93 = vmatmul.f32.gmra.mxu0 %v17_v42  ;;  %117 = vmatmul.f32.gmra.mxu1 %v25_v43 }
  0x59   :  { %144 = vmatmul.f32.gmra.mxu2 %v34_v44  ;;  %168 = vmatmul.f32.gmra.mxu3 %v42_v45 }
  0x5b   :  { %96 = vmatmul.f32.gmra.mxu0 %v18_v46  ;;  %120 = vmatmul.f32.gmra.mxu1 %v26_v47 }
  0xa0   :  { %v76_v48 = vpop.f32.mrf.mxu0  ;;  %v100_v49 = vpop.f32.mrf.mxu1 }
  0xa1   :  { %172 = vst [vmem:[%s513_s2] sm:$0xff] %v76_v48 }
  0xa2   :  { %180 = vst [vmem:[%s513_s2 + $0x40] sm:$0xff] %v100_v49 }
  0xa4   :  { %v124_v50 = vpop.f32.mrf.mxu2  ;;  %v148_v51 = vpop.f32.mrf.mxu3 }
  0xa5   :  { %188 = vst [vmem:[%s513_s2 + $0x80] sm:$0xff] %v124_v50 }
  0xa6   :  { %196 = vst [vmem:[%s513_s2 + $0xc0] sm:$0xff] %v148_v51 }
  0xa8   :  { %v79_v52 = vpop.f32.mrf.mxu0  ;;  %v103_v53 = vpop.f32.mrf.mxu1 }
  0xa9   :  { %173 = vst [vmem:[%s513_s2 + $0x8] sm:$0xff] %v79_v52 }
  0xaa   :  { %181 = vst [vmem:[%s513_s2 + $0x48] sm:$0xff] %v103_v53 }
  0xac   :  { %v127_v54 = vpop.f32.mrf.mxu2  ;;  %v151_v55 = vpop.f32.mrf.mxu3 }
  0xad   :  { %189 = vst [vmem:[%s513_s2 + $0x88] sm:$0xff] %v127_v54 }
  0xae   :  { %197 = vst [vmem:[%s513_s2 + $0xc8] sm:$0xff] %v151_v55 }
  0xb0   :  { %v82_v56 = vpop.f32.mrf.mxu0  ;;  %v106_v57 = vpop.f32.mrf.mxu1 }
  0xb1   :  { %174 = vst [vmem:[%s513_s2 + $0x10] sm:$0xff] %v82_v56 }
  0xb2   :  { %182 = vst [vmem:[%s513_s2 + $0x50] sm:$0xff] %v106_v57 }
  0xb4   :  { %v130_v58 = vpop.f32.mrf.mxu2  ;;  %v154_v59 = vpop.f32.mrf.mxu3 }
  0xb5   :  { %190 = vst [vmem:[%s513_s2 + $0x90] sm:$0xff] %v130_v58 }
  0xb6   :  { %198 = vst [vmem:[%s513_s2 + $0xd0] sm:$0xff] %v154_v59 }
  0xb8   :  { %v85_v60 = vpop.f32.mrf.mxu0  ;;  %v109_v61 = vpop.f32.mrf.mxu1 }
  0xb9   :  { %175 = vst [vmem:[%s513_s2 + $0x18] sm:$0xff] %v85_v60 }
  0xba   :  { %183 = vst [vmem:[%s513_s2 + $0x58] sm:$0xff] %v109_v61 }
  0xbc   :  { %v133_v62 = vpop.f32.mrf.mxu2  ;;  %v157_v63 = vpop.f32.mrf.mxu3 }
  0xbd   :  { %191 = vst [vmem:[%s513_s2 + $0x98] sm:$0xff] %v133_v62 }
  0xbe   :  { %199 = vst [vmem:[%s513_s2 + $0xd8] sm:$0xff] %v157_v63 }
  0xc0   :  { %v88_v0 = vpop.f32.mrf.mxu0  ;;  %v112_v1 = vpop.f32.mrf.mxu1 }
  0xc1   :  { %176 = vst [vmem:[%s513_s2 + $0x20] sm:$0xff] %v88_v0 }
  0xc2   :  { %184 = vst [vmem:[%s513_s2 + $0x60] sm:$0xff] %v112_v1 }
  0xc4   :  { %v136_v2 = vpop.f32.mrf.mxu2  ;;  %v160_v3 = vpop.f32.mrf.mxu3 }
  0xc5   :  { %192 = vst [vmem:[%s513_s2 + $0xa0] sm:$0xff] %v136_v2 }
  0xc6   :  { %200 = vst [vmem:[%s513_s2 + $0xe0] sm:$0xff] %v160_v3 }
  0xc8   :  { %v91_v4 = vpop.f32.mrf.mxu0  ;;  %v115_v5 = vpop.f32.mrf.mxu1 }
  0xc9   :  { %177 = vst [vmem:[%s513_s2 + $0x28] sm:$0xff] %v91_v4 }
  0xca   :  { %185 = vst [vmem:[%s513_s2 + $0x68] sm:$0xff] %v115_v5 }
  0xcc   :  { %v139_v6 = vpop.f32.mrf.mxu2  ;;  %v163_v7 = vpop.f32.mrf.mxu3 }
  0xcd   :  { %193 = vst [vmem:[%s513_s2 + $0xa8] sm:$0xff] %v139_v6 }
  0xce   :  { %201 = vst [vmem:[%s513_s2 + $0xe8] sm:$0xff] %v163_v7 }
  0xd0   :  { %v94_v8 = vpop.f32.mrf.mxu0  ;;  %v118_v9 = vpop.f32.mrf.mxu1 }
  0xd1   :  { %178 = vst [vmem:[%s513_s2 + $0x30] sm:$0xff] %v94_v8 }
  0xd2   :  { %186 = vst [vmem:[%s513_s2 + $0x70] sm:$0xff] %v118_v9 }
  0xd4   :  { %v142_v10 = vpop.f32.mrf.mxu2  ;;  %v166_v11 = vpop.f32.mrf.mxu3 }
  0xd5   :  { %194 = vst [vmem:[%s513_s2 + $0xb0] sm:$0xff] %v142_v10 }
  0xd6   :  { %202 = vst [vmem:[%s513_s2 + $0xf0] sm:$0xff] %v166_v11 }
  0xd8   :  { %v97_v12 = vpop.f32.mrf.mxu0  ;;  %v121_v13 = vpop.f32.mrf.mxu1 }
  0xd9   :  { %179 = vst [vmem:[%s513_s2 + $0x38] sm:$0xff] %v97_v12 }
  0xda   :  { %187 = vst [vmem:[%s513_s2 + $0x78] sm:$0xff] %v121_v13 }
  0xdc   :  { %v145_v14 = vpop.f32.mrf.mxu2  ;;  %v169_v15 = vpop.f32.mrf.mxu3 }
  0xdd   :  { %195 = vst [vmem:[%s513_s2 + $0xb8] sm:$0xff] %v145_v14 }
  0xde   :  { %203 = vst [vmem:[%s513_s2 + $0xf8] sm:$0xff] %v169_v15 }

// kernel: gcn_forward.3
= control target key start
LH: loop header
LB: loop body
LE: loop exit
PB: predicated region body
PF: predicated region fallthrough
CT: control target
= control target key end

     0   :  { %s850_s1 = inlined_call_operand.vmem [shape: f32[256,128], index: 1, kind: input, shape index: {}]   ;;  %s851_s0 = inlined_call_operand.vmem [shape: f32[256,256], index: 0, kind: input, shape index: {}]   ;;  %s852_s2 = inlined_call_operand.vmem [shape: f32[1,128], index: 2, kind: input, shape index: {}]   ;;  %s853_s3 = inlined_call_operand.vmem [shape: f32[256,128], index: 3, kind: output, shape index: {}]  }
   0x1   :  { %v93_v0 = vld [vmem:[%s850_s1 + $0x78] sm:$0xff]  ;;  %v92_v1 = vld [vmem:[%s850_s1 + $0x70] sm:$0xff]  ;;  %v91_v4 = vld [vmem:[%s850_s1 + $0x68] sm:$0xff] }
   0x2   :  { %v109_v2 = vld [vmem:[%s850_s1 + $0xf8] sm:$0xff]  ;;  %376 = vmatpush.msra.mxu2 %v93_v0  ;;  %v108_v3 = vld [vmem:[%s850_s1 + $0xf0] sm:$0xff]  ;;  %114 = vmatpush.msra.mxu0 %v93_v0  ;;  %v107_v5 = vld [vmem:[%s850_s1 + $0xe8] sm:$0xff] }
   0x3   :  { %392 = vmatpush.msra.mxu3 %v109_v2  ;;  %227 = vmatpush.msra.mxu1 %v109_v2  ;;  %v90_v6 = vld [vmem:[%s850_s1 + $0x60] sm:$0xff]  ;;  %v89_v8 = vld [vmem:[%s850_s1 + $0x58] sm:$0xff]  ;;  %v88_v10 = vld [vmem:[%s850_s1 + $0x50] sm:$0xff] }
   0x4   :  { %377 = vmatpush.msra.mxu2 %v92_v1  ;;  %115 = vmatpush.msra.mxu0 %v92_v1  ;;  %v106_v7 = vld [vmem:[%s850_s1 + $0xe0] sm:$0xff]  ;;  %v105_v9 = vld [vmem:[%s850_s1 + $0xd8] sm:$0xff]  ;;  %v104_v11 = vld [vmem:[%s850_s1 + $0xd0] sm:$0xff] }
   0x5   :  { %393 = vmatpush.msra.mxu3 %v108_v3  ;;  %228 = vmatpush.msra.mxu1 %v108_v3  ;;  %v87_v12 = vld [vmem:[%s850_s1 + $0x48] sm:$0xff]  ;;  %v86_v14 = vld [vmem:[%s850_s1 + $0x40] sm:$0xff]  ;;  %v85_v16 = vld [vmem:[%s850_s1 + $0x38] sm:$0xff] }
   0x6   :  { %378 = vmatpush.msra.mxu2 %v91_v4  ;;  %116 = vmatpush.msra.mxu0 %v91_v4  ;;  %v103_v13 = vld [vmem:[%s850_s1 + $0xc8] sm:$0xff]  ;;  %v102_v15 = vld [vmem:[%s850_s1 + $0xc0] sm:$0xff]  ;;  %v101_v17 = vld [vmem:[%s850_s1 + $0xb8] sm:$0xff] }
   0x7   :  { %394 = vmatpush.msra.mxu3 %v107_v5  ;;  %229 = vmatpush.msra.mxu1 %v107_v5  ;;  %v84_v18 = vld [vmem:[%s850_s1 + $0x30] sm:$0xff]  ;;  %v83_v20 = vld [vmem:[%s850_s1 + $0x28] sm:$0xff]  ;;  %v82_v22 = vld [vmem:[%s850_s1 + $0x20] sm:$0xff] }
   0x8   :  { %379 = vmatpush.msra.mxu2 %v90_v6  ;;  %117 = vmatpush.msra.mxu0 %v90_v6  ;;  %v100_v19 = vld [vmem:[%s850_s1 + $0xb0] sm:$0xff]  ;;  %v99_v21 = vld [vmem:[%s850_s1 + $0xa8] sm:$0xff]  ;;  %v98_v23 = vld [vmem:[%s850_s1 + $0xa0] sm:$0xff] }
   0x9   :  { %395 = vmatpush.msra.mxu3 %v106_v7  ;;  %230 = vmatpush.msra.mxu1 %v106_v7  ;;  %v81_v24 = vld [vmem:[%s850_s1 + $0x18] sm:$0xff]  ;;  %v80_v26 = vld [vmem:[%s850_s1 + $0x10] sm:$0xff]  ;;  %v79_v28 = vld [vmem:[%s850_s1 + $0x8] sm:$0xff] }
   0xa   :  { %380 = vmatpush.msra.mxu2 %v89_v8  ;;  %118 = vmatpush.msra.mxu0 %v89_v8  ;;  %v97_v25 = vld [vmem:[%s850_s1 + $0x98] sm:$0xff]  ;;  %v96_v27 = vld [vmem:[%s850_s1 + $0x90] sm:$0xff]  ;;  %v95_v29 = vld [vmem:[%s850_s1 + $0x88] sm:$0xff] }
   0xb   :  { %396 = vmatpush.msra.mxu3 %v105_v9  ;;  %231 = vmatpush.msra.mxu1 %v105_v9  ;;  %v78_v30 = vld [vmem:[%s850_s1] sm:$0xff]  ;;  %v47_v33 = vld [vmem:[%s851_s0 + $0x108] sm:$0xff]  ;;  %v48_v36 = vld [vmem:[%s851_s0 + $0x110] sm:$0xff] }
   0xc   :  { %381 = vmatpush.msra.mxu2 %v88_v10  ;;  %119 = vmatpush.msra.mxu0 %v88_v10  ;;  %v94_v31 = vld [vmem:[%s850_s1 + $0x80] sm:$0xff]  ;;  %v15_v35 = vld [vmem:[%s851_s0 + $0x8] sm:$0xff]  ;;  %v49_v37 = vld [vmem:[%s851_s0 + $0x118] sm:$0xff] }
   0xd   :  { %397 = vmatpush.msra.mxu3 %v104_v11  ;;  %232 = vmatpush.msra.mxu1 %v104_v11  ;;  %v46_v32 = vld [vmem:[%s851_s0 + $0x100] sm:$0xff]  ;;  %v16_v38 = vld [vmem:[%s851_s0 + $0x10] sm:$0xff]  ;;  %v17_v39 = vld [vmem:[%s851_s0 + $0x18] sm:$0xff] }
   0xe   :  { %382 = vmatpush.msra.mxu2 %v87_v12  ;;  %120 = vmatpush.msra.mxu0 %v87_v12  ;;  %v14_v34 = vld [vmem:[%s851_s0] sm:$0xff]  ;;  %v51_v41 = vld [vmem:[%s851_s0 + $0x128] sm:$0xff]  ;;  %v52_v44 = vld [vmem:[%s851_s0 + $0x130] sm:$0xff] }
   0xf   :  { %398 = vmatpush.msra.mxu3 %v103_v13  ;;  %233 = vmatpush.msra.mxu1 %v103_v13  ;;  %v50_v40 = vld [vmem:[%s851_s0 + $0x120] sm:$0xff]  ;;  %v19_v43 = vld [vmem:[%s851_s0 + $0x28] sm:$0xff]  ;;  %v53_v45 = vld [vmem:[%s851_s0 + $0x138] sm:$0xff] }
  0x10   :  { %383 = vmatpush.msra.mxu2 %v86_v14  ;;  %121 = vmatpush.msra.mxu0 %v86_v14  ;;  %v18_v42 = vld [vmem:[%s851_s0 + $0x20] sm:$0xff]  ;;  %v20_v46 = vld [vmem:[%s851_s0 + $0x30] sm:$0xff]  ;;  %v21_v47 = vld [vmem:[%s851_s0 + $0x38] sm:$0xff] }
  0x11   :  { %399 = vmatpush.msra.mxu3 %v102_v15  ;;  %234 = vmatpush.msra.mxu1 %v102_v15  ;;  %v54_v48 = vld [vmem:[%s851_s0 + $0x140] sm:$0xff]  ;;  %v55_v49 = vld [vmem:[%s851_s0 + $0x148] sm:$0xff]  ;;  %v56_v52 = vld [vmem:[%s851_s0 + $0x150] sm:$0xff] }
  0x12   :  { %384 = vmatpush.msra.mxu2 %v85_v16  ;;  %122 = vmatpush.msra.mxu0 %v85_v16  ;;  %v22_v50 = vld [vmem:[%s851_s0 + $0x40] sm:$0xff]  ;;  %v23_v51 = vld [vmem:[%s851_s0 + $0x48] sm:$0xff]  ;;  %v57_v53 = vld [vmem:[%s851_s0 + $0x158] sm:$0xff] }
  0x13   :  { %400 = vmatpush.msra.mxu3 %v101_v17  ;;  %235 = vmatpush.msra.mxu1 %v101_v17  ;;  %v24_v54 = vld [vmem:[%s851_s0 + $0x50] sm:$0xff]  ;;  %v25_v55 = vld [vmem:[%s851_s0 + $0x58] sm:$0xff]  ;;  %v58_v56 = vld [vmem:[%s851_s0 + $0x160] sm:$0xff] }
  0x14   :  { %385 = vmatpush.msra.mxu2 %v84_v18  ;;  %123 = vmatpush.msra.mxu0 %v84_v18  ;;  %v59_v57 = vld [vmem:[%s851_s0 + $0x168] sm:$0xff]  ;;  %v26_v58 = vld [vmem:[%s851_s0 + $0x60] sm:$0xff]  ;;  %v60_v60 = vld [vmem:[%s851_s0 + $0x170] sm:$0xff] }
  0x15   :  { %401 = vmatpush.msra.mxu3 %v100_v19  ;;  %236 = vmatpush.msra.mxu1 %v100_v19  ;;  %v27_v59 = vld [vmem:[%s851_s0 + $0x68] sm:$0xff]  ;;  %v61_v61 = vld [vmem:[%s851_s0 + $0x178] sm:$0xff]  ;;  %v28_v62 = vld [vmem:[%s851_s0 + $0x70] sm:$0xff] }
  0x16   :  { %386 = vmatpush.msra.mxu2 %v83_v20  ;;  %124 = vmatpush.msra.mxu0 %v83_v20  ;;  %v29_v63 = vld [vmem:[%s851_s0 + $0x78] sm:$0xff]  ;;  %v62_v0 = vld [vmem:[%s851_s0 + $0x180] sm:$0xff]  ;;  %v63_v1 = vld [vmem:[%s851_s0 + $0x188] sm:$0xff] }
  0x17   :  { %402 = vmatpush.msra.mxu3 %v99_v21  ;;  %237 = vmatpush.msra.mxu1 %v99_v21  ;;  %v30_v2 = vld [vmem:[%s851_s0 + $0x80] sm:$0xff]  ;;  %v31_v3 = vld [vmem:[%s851_s0 + $0x88] sm:$0xff]  ;;  %v64_v4 = vld [vmem:[%s851_s0 + $0x190] sm:$0xff] }
  0x18   :  { %387 = vmatpush.msra.mxu2 %v82_v22  ;;  %125 = vmatpush.msra.mxu0 %v82_v22  ;;  %v65_v5 = vld [vmem:[%s851_s0 + $0x198] sm:$0xff]  ;;  %v32_v6 = vld [vmem:[%s851_s0 + $0x90] sm:$0xff]  ;;  %v66_v8 = vld [vmem:[%s851_s0 + $0x1a0] sm:$0xff] }
  0x19   :  { %403 = vmatpush.msra.mxu3 %v98_v23  ;;  %238 = vmatpush.msra.mxu1 %v98_v23  ;;  %v33_v7 = vld [vmem:[%s851_s0 + $0x98] sm:$0xff]  ;;  %v67_v9 = vld [vmem:[%s851_s0 + $0x1a8] sm:$0xff]  ;;  %v34_v10 = vld [vmem:[%s851_s0 + $0xa0] sm:$0xff] }
  0x1a   :  { %388 = vmatpush.msra.mxu2 %v81_v24  ;;  %126 = vmatpush.msra.mxu0 %v81_v24  ;;  %v35_v11 = vld [vmem:[%s851_s0 + $0xa8] sm:$0xff]  ;;  %v68_v12 = vld [vmem:[%s851_s0 + $0x1b0] sm:$0xff]  ;;  %v69_v13 = vld [vmem:[%s851_s0 + $0x1b8] sm:$0xff] }
  0x1b   :  { %404 = vmatpush.msra.mxu3 %v97_v25  ;;  %239 = vmatpush.msra.mxu1 %v97_v25  ;;  %v36_v14 = vld [vmem:[%s851_s0 + $0xb0] sm:$0xff]  ;;  %v37_v15 = vld [vmem:[%s851_s0 + $0xb8] sm:$0xff]  ;;  %v70_v16 = vld [vmem:[%s851_s0 + $0x1c0] sm:$0xff] }
  0x1c   :  { %389 = vmatpush.msra.mxu2 %v80_v26  ;;  %127 = vmatpush.msra.mxu0 %v80_v26  ;;  %v71_v17 = vld [vmem:[%s851_s0 + $0x1c8] sm:$0xff]  ;;  %v38_v18 = vld [vmem:[%s851_s0 + $0xc0] sm:$0xff]  ;;  %v72_v20 = vld [vmem:[%s851_s0 + $0x1d0] sm:$0xff] }
  0x1d   :  { %405 = vmatpush.msra.mxu3 %v96_v27  ;;  %240 = vmatpush.msra.mxu1 %v96_v27  ;;  %v39_v19 = vld [vmem:[%s851_s0 + $0xc8] sm:$0xff]  ;;  %v73_v21 = vld [vmem:[%s851_s0 + $0x1d8] sm:$0xff]  ;;  %v40_v22 = vld [vmem:[%s851_s0 + $0xd0] sm:$0xff] }
  0x1e   :  { %390 = vmatpush.msra.mxu2 %v79_v28  ;;  %128 = vmatpush.msra.mxu0 %v79_v28  ;;  %v41_v23 = vld [vmem:[%s851_s0 + $0xd8] sm:$0xff]  ;;  %v74_v24 = vld [vmem:[%s851_s0 + $0x1e0] sm:$0xff]  ;;  %v75_v25 = vld [vmem:[%s851_s0 + $0x1e8] sm:$0xff] }
  0x1f   :  { %406 = vmatpush.msra.mxu3 %v95_v29  ;;  %241 = vmatpush.msra.mxu1 %v95_v29  ;;  %v42_v26 = vld [vmem:[%s851_s0 + $0xe0] sm:$0xff]  ;;  %v43_v27 = vld [vmem:[%s851_s0 + $0xe8] sm:$0xff]  ;;  %v76_v28 = vld [vmem:[%s851_s0 + $0x1f0] sm:$0xff] }
  0x20   :  { %391 = vmatpush.msra.mxu2 %v78_v30  ;;  %129 = vmatpush.msra.mxu0 %v78_v30  ;;  %v77_v29 = vld [vmem:[%s851_s0 + $0x1f8] sm:$0xff]  ;;  %v44_v30 = vld [vmem:[%s851_s0 + $0xf0] sm:$0xff] }
  0x21   :  { %407 = vmatpush.msra.mxu3 %v94_v31  ;;  %178 = vmatmul.f32.vlgmr.msra.gmra.mxu2 %v46_v32  ;;  %v720_v32 = vld [vmem:[%s852_s2] ss:$0 sm:$0xff] }
  0x22   :  { %291 = vmatmul.f32.vlgmr.msra.gmra.mxu3 %v47_v33  ;;  %242 = vmatpush.msra.mxu1 %v94_v31  ;;  %v45_v31 = vld [vmem:[%s851_s0 + $0xf8] sm:$0xff] }
  0x23   :  { %130 = vmatmul.f32.vlgmr.msra.gmra.mxu0 %v14_v34  ;;  %243 = vmatmul.f32.vlgmr.msra.gmra.mxu1 %v15_v35 }
  0x29   :  { %181 = vmatmul.f32.gmra.mxu2 %v48_v36 }
  0x2a   :  { %294 = vmatmul.f32.gmra.mxu3 %v49_v37 }
  0x2b   :  { %133 = vmatmul.f32.gmra.mxu0 %v16_v38  ;;  %246 = vmatmul.f32.gmra.mxu1 %v17_v39 }
  0x31   :  { %184 = vmatmul.f32.gmra.mxu2 %v50_v40 }
  0x32   :  { %297 = vmatmul.f32.gmra.mxu3 %v51_v41 }
  0x33   :  { %136 = vmatmul.f32.gmra.mxu0 %v18_v42  ;;  %249 = vmatmul.f32.gmra.mxu1 %v19_v43 }
  0x39   :  { %187 = vmatmul.f32.gmra.mxu2 %v52_v44 }
  0x3a   :  { %300 = vmatmul.f32.gmra.mxu3 %v53_v45 }
  0x3b   :  { %139 = vmatmul.f32.gmra.mxu0 %v20_v46  ;;  %252 = vmatmul.f32.gmra.mxu1 %v21_v47 }
  0x41   :  { %190 = vmatmul.f32.gmra.mxu2 %v54_v48 }
  0x42   :  { %303 = vmatmul.f32.gmra.mxu3 %v55_v49 }
  0x43   :  { %142 = vmatmul.f32.gmra.mxu0 %v22_v50  ;;  %255 = vmatmul.f32.gmra.mxu1 %v23_v51 }
  0x49   :  { %193 = vmatmul.f32.gmra.mxu2 %v56_v52 }
  0x4a   :  { %306 = vmatmul.f32.gmra.mxu3 %v57_v53 }
  0x4b   :  { %145 = vmatmul.f32.gmra.mxu0 %v24_v54  ;;  %258 = vmatmul.f32.gmra.mxu1 %v25_v55 }
  0x51   :  { %196 = vmatmul.f32.gmra.mxu2 %v58_v56 }
  0x52   :  { %309 = vmatmul.f32.gmra.mxu3 %v59_v57 }
  0x53   :  { %148 = vmatmul.f32.gmra.mxu0 %v26_v58  ;;  %261 = vmatmul.f32.gmra.mxu1 %v27_v59 }
  0x59   :  { %199 = vmatmul.f32.gmra.mxu2 %v60_v60 }
  0x5a   :  { %312 = vmatmul.f32.gmra.mxu3 %v61_v61 }
  0x5b   :  { %151 = vmatmul.f32.gmra.mxu0 %v28_v62  ;;  %264 = vmatmul.f32.gmra.mxu1 %v29_v63 }
  0x61   :  { %202 = vmatmul.f32.gmra.mxu2 %v62_v0 }
  0x62   :  { %315 = vmatmul.f32.gmra.mxu3 %v63_v1 }
  0x63   :  { %154 = vmatmul.f32.gmra.mxu0 %v30_v2  ;;  %267 = vmatmul.f32.gmra.mxu1 %v31_v3 }
  0x69   :  { %205 = vmatmul.f32.gmra.mxu2 %v64_v4 }
  0x6a   :  { %318 = vmatmul.f32.gmra.mxu3 %v65_v5 }
  0x6b   :  { %157 = vmatmul.f32.gmra.mxu0 %v32_v6  ;;  %270 = vmatmul.f32.gmra.mxu1 %v33_v7 }
  0x71   :  { %208 = vmatmul.f32.gmra.mxu2 %v66_v8 }
  0x72   :  { %321 = vmatmul.f32.gmra.mxu3 %v67_v9 }
  0x73   :  { %160 = vmatmul.f32.gmra.mxu0 %v34_v10  ;;  %273 = vmatmul.f32.gmra.mxu1 %v35_v11 }
  0x79   :  { %211 = vmatmul.f32.gmra.mxu2 %v68_v12 }
  0x7a   :  { %324 = vmatmul.f32.gmra.mxu3 %v69_v13 }
  0x7b   :  { %163 = vmatmul.f32.gmra.mxu0 %v36_v14  ;;  %276 = vmatmul.f32.gmra.mxu1 %v37_v15 }
  0x81   :  { %214 = vmatmul.f32.gmra.mxu2 %v70_v16 }
  0x82   :  { %327 = vmatmul.f32.gmra.mxu3 %v71_v17 }
  0x83   :  { %166 = vmatmul.f32.gmra.mxu0 %v38_v18  ;;  %279 = vmatmul.f32.gmra.mxu1 %v39_v19 }
  0x89   :  { %217 = vmatmul.f32.gmra.mxu2 %v72_v20 }
  0x8a   :  { %330 = vmatmul.f32.gmra.mxu3 %v73_v21 }
  0x8b   :  { %169 = vmatmul.f32.gmra.mxu0 %v40_v22  ;;  %282 = vmatmul.f32.gmra.mxu1 %v41_v23 }
  0x91   :  { %220 = vmatmul.f32.gmra.mxu2 %v74_v24 }
  0x92   :  { %333 = vmatmul.f32.gmra.mxu3 %v75_v25 }
  0x93   :  { %172 = vmatmul.f32.gmra.mxu0 %v42_v26  ;;  %285 = vmatmul.f32.gmra.mxu1 %v43_v27 }
  0x99   :  { %223 = vmatmul.f32.gmra.mxu2 %v76_v28 }
  0x9a   :  { %336 = vmatmul.f32.gmra.mxu3 %v77_v29 }
  0x9b   :  { %175 = vmatmul.f32.gmra.mxu0 %v44_v30  ;;  %288 = vmatmul.f32.gmra.mxu1 %v45_v31 }
  0xa0   :  { %v131_v33 = vpop.f32.mrf.mxu0  ;;  %v244_v34 = vpop.f32.mrf.mxu1 }
  0xa1   :  { %v132_v35 = vadd.f32 %v720_v32, %v131_v33 }
  0xa3   :  { %v245_v36 = vadd.f32 %v244_v34, %v132_v35 }
  0xa4   :  { %v179_v37 = vpop.f32.mrf.mxu2 }
  0xa5   :  { %v292_v38 = vpop.f32.mrf.mxu3  ;;  %v180_v39 = vadd.f32 %v720_v32, %v179_v37  ;;  %340 = vst [vmem:[%s853_s3] sm:$0xff] %v245_v36 }
  0xa7   :  { %v293_v40 = vadd.f32 %v292_v38, %v180_v39 }
  0xa8   :  { %v134_v41 = vpop.f32.mrf.mxu0  ;;  %v247_v42 = vpop.f32.mrf.mxu1 }
  0xa9   :  { %356 = vst [vmem:[%s853_s3 + $0x80] sm:$0xff] %v293_v40  ;;  %v135_v43 = vadd.f32 %v720_v32, %v134_v41 }
  0xab   :  { %v248_v44 = vadd.f32 %v247_v42, %v135_v43 }
  0xac   :  { %v182_v45 = vpop.f32.mrf.mxu2 }
  0xad   :  { %v295_v46 = vpop.f32.mrf.mxu3  ;;  %v183_v47 = vadd.f32 %v720_v32, %v182_v45  ;;  %341 = vst [vmem:[%s853_s3 + $0x8] sm:$0xff] %v248_v44 }
  0xaf   :  { %v296_v48 = vadd.f32 %v295_v46, %v183_v47 }
  0xb0   :  { %v137_v49 = vpop.f32.mrf.mxu0  ;;  %v250_v50 = vpop.f32.mrf.mxu1 }
  0xb1   :  { %357 = vst [vmem:[%s853_s3 + $0x88] sm:$0xff] %v296_v48  ;;  %v138_v51 = vadd.f32 %v720_v32, %v137_v49 }
  0xb3   :  { %v251_v52 = vadd.f32 %v250_v50, %v138_v51 }
  0xb4   :  { %v185_v53 = vpop.f32.mrf.mxu2 }
  0xb5   :  { %v298_v54 = vpop.f32.mrf.mxu3  ;;  %v186_v55 = vadd.f32 %v720_v32, %v185_v53  ;;  %342 = vst [vmem:[%s853_s3 + $0x10] sm:$0xff] %v251_v52 }
  0xb7   :  { %v299_v56 = vadd.f32 %v298_v54, %v186_v55 }
  0xb8   :  { %v140_v57 = vpop.f32.mrf.mxu0  ;;  %v253_v58 = vpop.f32.mrf.mxu1 }
  0xb9   :  { %358 = vst [vmem:[%s853_s3 + $0x90] sm:$0xff] %v299_v56  ;;  %v141_v59 = vadd.f32 %v720_v32, %v140_v57 }
  0xbb   :  { %v254_v60 = vadd.f32 %v253_v58, %v141_v59 }
  0xbc   :  { %v188_v61 = vpop.f32.mrf.mxu2 }
  0xbd   :  { %v301_v62 = vpop.f32.mrf.mxu3  ;;  %v189_v63 = vadd.f32 %v720_v32, %v188_v61  ;;  %343 = vst [vmem:[%s853_s3 + $0x18] sm:$0xff] %v254_v60 }
  0xbf   :  { %v302_v0 = vadd.f32 %v301_v62, %v189_v63 }
  0xc0   :  { %v143_v1 = vpop.f32.mrf.mxu0  ;;  %v256_v2 = vpop.f32.mrf.mxu1 }
  0xc1   :  { %359 = vst [vmem:[%s853_s3 + $0x98] sm:$0xff] %v302_v0  ;;  %v144_v3 = vadd.f32 %v720_v32, %v143_v1 }
  0xc3   :  { %v257_v4 = vadd.f32 %v256_v2, %v144_v3 }
  0xc4   :  { %v191_v5 = vpop.f32.mrf.mxu2 }
  0xc5   :  { %v304_v6 = vpop.f32.mrf.mxu3  ;;  %v192_v7 = vadd.f32 %v720_v32, %v191_v5  ;;  %344 = vst [vmem:[%s853_s3 + $0x20] sm:$0xff] %v257_v4 }
  0xc7   :  { %v305_v8 = vadd.f32 %v304_v6, %v192_v7 }
  0xc8   :  { %v146_v9 = vpop.f32.mrf.mxu0  ;;  %v259_v10 = vpop.f32.mrf.mxu1 }
  0xc9   :  { %360 = vst [vmem:[%s853_s3 + $0xa0] sm:$0xff] %v305_v8  ;;  %v147_v11 = vadd.f32 %v720_v32, %v146_v9 }
  0xcb   :  { %v260_v12 = vadd.f32 %v259_v10, %v147_v11 }
  0xcc   :  { %v194_v13 = vpop.f32.mrf.mxu2 }
  0xcd   :  { %v307_v14 = vpop.f32.mrf.mxu3  ;;  %v195_v15 = vadd.f32 %v720_v32, %v194_v13  ;;  %345 = vst [vmem:[%s853_s3 + $0x28] sm:$0xff] %v260_v12 }
  0xcf   :  { %v308_v16 = vadd.f32 %v307_v14, %v195_v15 }
  0xd0   :  { %v149_v17 = vpop.f32.mrf.mxu0  ;;  %v262_v18 = vpop.f32.mrf.mxu1 }
  0xd1   :  { %361 = vst [vmem:[%s853_s3 + $0xa8] sm:$0xff] %v308_v16  ;;  %v150_v19 = vadd.f32 %v720_v32, %v149_v17 }
  0xd3   :  { %v263_v20 = vadd.f32 %v262_v18, %v150_v19 }
  0xd4   :  { %v197_v21 = vpop.f32.mrf.mxu2 }
  0xd5   :  { %v310_v22 = vpop.f32.mrf.mxu3  ;;  %v198_v23 = vadd.f32 %v720_v32, %v197_v21  ;;  %346 = vst [vmem:[%s853_s3 + $0x30] sm:$0xff] %v263_v20 }
  0xd7   :  { %v311_v24 = vadd.f32 %v310_v22, %v198_v23 }
  0xd8   :  { %v152_v25 = vpop.f32.mrf.mxu0  ;;  %v265_v26 = vpop.f32.mrf.mxu1 }
  0xd9   :  { %362 = vst [vmem:[%s853_s3 + $0xb0] sm:$0xff] %v311_v24  ;;  %v153_v27 = vadd.f32 %v720_v32, %v152_v25 }
  0xdb   :  { %v266_v28 = vadd.f32 %v265_v26, %v153_v27 }
  0xdc   :  { %v200_v29 = vpop.f32.mrf.mxu2 }
  0xdd   :  { %v313_v30 = vpop.f32.mrf.mxu3  ;;  %v201_v31 = vadd.f32 %v720_v32, %v200_v29  ;;  %347 = vst [vmem:[%s853_s3 + $0x38] sm:$0xff] %v266_v28 }
  0xdf   :  { %v314_v33 = vadd.f32 %v313_v30, %v201_v31 }
  0xe0   :  { %v155_v34 = vpop.f32.mrf.mxu0  ;;  %v268_v35 = vpop.f32.mrf.mxu1 }
  0xe1   :  { %363 = vst [vmem:[%s853_s3 + $0xb8] sm:$0xff] %v314_v33  ;;  %v156_v36 = vadd.f32 %v720_v32, %v155_v34 }
  0xe3   :  { %v269_v37 = vadd.f32 %v268_v35, %v156_v36 }
  0xe4   :  { %v203_v38 = vpop.f32.mrf.mxu2 }
  0xe5   :  { %v316_v39 = vpop.f32.mrf.mxu3  ;;  %v204_v40 = vadd.f32 %v720_v32, %v203_v38  ;;  %348 = vst [vmem:[%s853_s3 + $0x40] sm:$0xff] %v269_v37 }
  0xe7   :  { %v317_v41 = vadd.f32 %v316_v39, %v204_v40 }
  0xe8   :  { %v158_v42 = vpop.f32.mrf.mxu0  ;;  %v271_v43 = vpop.f32.mrf.mxu1 }
  0xe9   :  { %364 = vst [vmem:[%s853_s3 + $0xc0] sm:$0xff] %v317_v41  ;;  %v159_v44 = vadd.f32 %v720_v32, %v158_v42 }
  0xeb   :  { %v272_v45 = vadd.f32 %v271_v43, %v159_v44 }
  0xec   :  { %v206_v46 = vpop.f32.mrf.mxu2 }
  0xed   :  { %v319_v47 = vpop.f32.mrf.mxu3  ;;  %v207_v48 = vadd.f32 %v720_v32, %v206_v46  ;;  %349 = vst [vmem:[%s853_s3 + $0x48] sm:$0xff] %v272_v45 }
  0xef   :  { %v320_v49 = vadd.f32 %v319_v47, %v207_v48 }
  0xf0   :  { %v161_v50 = vpop.f32.mrf.mxu0  ;;  %v274_v51 = vpop.f32.mrf.mxu1 }
  0xf1   :  { %365 = vst [vmem:[%s853_s3 + $0xc8] sm:$0xff] %v320_v49  ;;  %v162_v52 = vadd.f32 %v720_v32, %v161_v50 }
  0xf3   :  { %v275_v53 = vadd.f32 %v274_v51, %v162_v52 }
  0xf4   :  { %v209_v54 = vpop.f32.mrf.mxu2 }
  0xf5   :  { %v322_v55 = vpop.f32.mrf.mxu3  ;;  %v210_v56 = vadd.f32 %v720_v32, %v209_v54  ;;  %350 = vst [vmem:[%s853_s3 + $0x50] sm:$0xff] %v275_v53 }
  0xf7   :  { %v323_v57 = vadd.f32 %v322_v55, %v210_v56 }
  0xf8   :  { %v164_v58 = vpop.f32.mrf.mxu0  ;;  %v277_v59 = vpop.f32.mrf.mxu1 }
  0xf9   :  { %366 = vst [vmem:[%s853_s3 + $0xd0] sm:$0xff] %v323_v57  ;;  %v165_v60 = vadd.f32 %v720_v32, %v164_v58 }
  0xfb   :  { %v278_v61 = vadd.f32 %v277_v59, %v165_v60 }
  0xfc   :  { %v212_v62 = vpop.f32.mrf.mxu2 }
  0xfd   :  { %v325_v63 = vpop.f32.mrf.mxu3  ;;  %v213_v0 = vadd.f32 %v720_v32, %v212_v62  ;;  %351 = vst [vmem:[%s853_s3 + $0x58] sm:$0xff] %v278_v61 }
  0xff   :  { %v326_v1 = vadd.f32 %v325_v63, %v213_v0 }
 0x100   :  { %v167_v2 = vpop.f32.mrf.mxu0  ;;  %v280_v3 = vpop.f32.mrf.mxu1 }
 0x101   :  { %367 = vst [vmem:[%s853_s3 + $0xd8] sm:$0xff] %v326_v1  ;;  %v168_v4 = vadd.f32 %v720_v32, %v167_v2 }
 0x103   :  { %v281_v5 = vadd.f32 %v280_v3, %v168_v4 }
 0x104   :  { %v215_v6 = vpop.f32.mrf.mxu2 }
 0x105   :  { %v328_v7 = vpop.f32.mrf.mxu3  ;;  %v216_v8 = vadd.f32 %v720_v32, %v215_v6  ;;  %352 = vst [vmem:[%s853_s3 + $0x60] sm:$0xff] %v281_v5 }
 0x107   :  { %v329_v9 = vadd.f32 %v328_v7, %v216_v8 }
 0x108   :  { %v170_v10 = vpop.f32.mrf.mxu0  ;;  %v283_v11 = vpop.f32.mrf.mxu1 }
 0x109   :  { %368 = vst [vmem:[%s853_s3 + $0xe0] sm:$0xff] %v329_v9  ;;  %v171_v12 = vadd.f32 %v720_v32, %v170_v10 }
 0x10b   :  { %v284_v13 = vadd.f32 %v283_v11, %v171_v12 }
 0x10c   :  { %v218_v14 = vpop.f32.mrf.mxu2 }
 0x10d   :  { %v331_v15 = vpop.f32.mrf.mxu3  ;;  %v219_v16 = vadd.f32 %v720_v32, %v218_v14  ;;  %353 = vst [vmem:[%s853_s3 + $0x68] sm:$0xff] %v284_v13 }
 0x10f   :  { %v332_v17 = vadd.f32 %v331_v15, %v219_v16 }
 0x110   :  { %v173_v18 = vpop.f32.mrf.mxu0  ;;  %v286_v19 = vpop.f32.mrf.mxu1 }
 0x111   :  { %369 = vst [vmem:[%s853_s3 + $0xe8] sm:$0xff] %v332_v17  ;;  %v174_v20 = vadd.f32 %v720_v32, %v173_v18 }
 0x113   :  { %v287_v21 = vadd.f32 %v286_v19, %v174_v20 }
 0x114   :  { %v221_v22 = vpop.f32.mrf.mxu2 }
 0x115   :  { %v334_v23 = vpop.f32.mrf.mxu3  ;;  %v222_v24 = vadd.f32 %v720_v32, %v221_v22  ;;  %354 = vst [vmem:[%s853_s3 + $0x70] sm:$0xff] %v287_v21 }
 0x117   :  { %v335_v25 = vadd.f32 %v334_v23, %v222_v24 }
 0x118   :  { %v176_v26 = vpop.f32.mrf.mxu0  ;;  %v289_v27 = vpop.f32.mrf.mxu1 }
 0x119   :  { %370 = vst [vmem:[%s853_s3 + $0xf0] sm:$0xff] %v335_v25  ;;  %v177_v28 = vadd.f32 %v720_v32, %v176_v26 }
 0x11b   :  { %v290_v29 = vadd.f32 %v289_v27, %v177_v28 }
 0x11c   :  { %v224_v30 = vpop.f32.mrf.mxu2 }
 0x11d   :  { %v337_v31 = vpop.f32.mrf.mxu3  ;;  %v225_v33 = vadd.f32 %v720_v32, %v224_v30  ;;  %355 = vst [vmem:[%s853_s3 + $0x78] sm:$0xff] %v290_v29 }
 0x11f   :  { %v338_v34 = vadd.f32 %v337_v31, %v225_v33 }
 0x121   :  { %371 = vst [vmem:[%s853_s3 + $0xf8] sm:$0xff] %v338_v34 }

</bundles_post_ra>
